<compile_context>
chip_gen: v6e
topology: v6e:2x2x1
jax: 0.10.0
libtpu: 0.0.40
codegen_flags: <defaults>
</compile_context>

<pallas_src>
import functools

import jax
import jax.numpy as jnp
import numpy as np
from jax.experimental import pallas as pl
from jax.experimental.pallas import tpu as pltpu


def _dwce_kernel(logits_ref, targets_ref, s_out, cnt_out, *,
                 tile_n: int, n_rows: int, tiles_per_split: int,
                 needs_row_mask: bool):
    i = pl.program_id(1)        # reduction (batch-tile) axis within this split

    @pl.when(i == 0)
    def _init():
        s_out[...] = jnp.zeros_like(s_out)
        cnt_out[...] = jnp.zeros_like(cnt_out)

    # Stream native dtype; upcast in-register (f32 math everywhere: v5e has no
    # bf16 VALU/EUP and accumulation must be f32 anyway).
    logits = logits_ref[...].astype(jnp.float32)          # (tile_n, C)
    tgt = targets_ref[...]                                 # (tile_n, 1) int32
    tn, c = logits.shape

    if needs_row_mask:
        # Ragged last tile and/or over-covering (split, tile) iterations: force
        # the target of any out-of-range row to -1 (never matches a class id),
        # so those rows contribute exactly zero. (tile_n, 1)-sized op only — no
        # per-element AND in the (tile_n, C) domain.
        t = pl.program_id(0) * tiles_per_split + i
        row_ids = t * tile_n + jax.lax.broadcasted_iota(jnp.int32, (tn, 1), 0)
        tgt = jnp.where(row_ids < n_rows, tgt, jnp.int32(-1))

    # Stable per-row logsumexp; the (tile_n, C) log-softmax is never formed.
    m = jnp.max(logits, axis=-1, keepdims=True)                        # (tn, 1)
    lse = jnp.log(jnp.sum(jnp.exp(logits - m), axis=-1, keepdims=True)) + m

    # One-hot select. ignore_index (and masked rows, -1) never match a class id
    # (asserted in the wrapper), so no separate validity mask is needed.
    class_ids = jax.lax.broadcasted_iota(jnp.int32, (1, c), 1)
    sel = tgt == class_ids                                             # (tn, C)

    # nll_i sits exactly in the target column of (lse - logits); use a select
    # (not a multiply) so garbage/NaN from out-of-bounds edge rows cannot leak.
    contrib = jnp.where(sel, lse - logits, 0.0)                        # (tn, C)

    s_out[...] += jnp.sum(contrib, axis=0, keepdims=True).reshape(1, 1, c)
    cnt_out[...] += jnp.sum(sel.astype(jnp.float32), axis=0,
                            keepdims=True).reshape(1, 1, c)


def dynamic_weight_cross_entropy_loss(logits, targets, *,
                                      num_classes: int,
                                      weight_mode: str = "per_batch",
                                      ignore_index: int = -100,
                                      reduction: str = "mean",
                                      label_smoothing: float = 0.0,
                                      clip_min: float = 0.0,
                                      clip_max: float = 10.0,
                                      tile_n: int | None = None,
                                      num_splits: int | None = None,
                                      vmem_limit_bytes: int | None = None):
    assert reduction == "mean", "only reduction='mean' implemented"
    assert label_smoothing == 0.0, "label_smoothing not implemented"
    assert weight_mode in ("per_batch", "none"), weight_mode
    # Required for the maskless one-hot (ignore_index never matches a class id).
    assert not (0 <= ignore_index < num_classes), (
        "ignore_index must lie outside [0, num_classes)")

    n, c = logits.shape
    assert c == num_classes

    targets_2d = targets.reshape(n, 1).astype(jnp.int32)

    itemsize = int(np.dtype(logits.dtype).itemsize)
    c_pad = ((c + 127) // 128) * 128               # VMEM lane padding of C

    # --- tile size: ~8 MiB of lane-padded logits per tile (double-buffered
    #     input ~16 MiB; explicit vmem_limit_bytes passed below). No hard
    #     row-count cap — per-step overhead amortizes best with big tiles. ----
    if tile_n is None:
        tile_n = (8 * 1024 * 1024) // max(c_pad * itemsize, 1)
    tile_n = int(tile_n)
    tile_n = max(8, (tile_n // 8) * 8)                   # sublane aligned
    tile_n = min(tile_n, max(8, ((n + 7) // 8) * 8))     # don't exceed N

    num_tiles = int(pl.cdiv(n, tile_n))

    # Leading "parallel" axis: sharded across TensorCores on v7x (2 TC/chip);
    # a cost-free outer loop on single-TC chips (v5e/v6e).
    if num_splits is None:
        num_splits = 2 if num_tiles >= 2 else 1
    num_splits = int(num_splits)
    tiles_per_split = int(pl.cdiv(num_tiles, num_splits))

    over_covers = num_splits * tiles_per_split != num_tiles
    needs_row_mask = (n % tile_n != 0) or over_covers

    if over_covers:
        # Excess (p, i) iterations read the (valid) last block; their rows are
        # masked out in-kernel, so they contribute exactly zero.
        def batch_map(p, i):
            return (jnp.minimum(p * tiles_per_split + i, num_tiles - 1), 0)
    else:
        def batch_map(p, i):
            return (p * tiles_per_split + i, 0)

    def out_map(p, i):
        return (p, 0, 0)

    if vmem_limit_bytes is None:
        tile_logits_bytes = tile_n * c_pad * itemsize
        tile_tgt_bytes = tile_n * 128 * 4          # int32, lane-padded
        out_bytes = 2 * 8 * c_pad * 4              # two tiny (1,1,C) outputs
        vmem_limit_bytes = int(2 * tile_logits_bytes + 2 * tile_tgt_bytes
                               + 4 * out_bytes + (4 << 20))   # + headroom

    kernel = functools.partial(
        _dwce_kernel,
        tile_n=tile_n, n_rows=n,
        tiles_per_split=tiles_per_split,
        needs_row_mask=needs_row_mask,
    )

    s_part, cnt_part = pl.pallas_call(
        kernel,
        out_shape=(jax.ShapeDtypeStruct((num_splits, 1, c), jnp.float32),
                   jax.ShapeDtypeStruct((num_splits, 1, c), jnp.float32)),
        grid_spec=pltpu.PrefetchScalarGridSpec(
            num_scalar_prefetch=0,
            grid=(num_splits, tiles_per_split),
            in_specs=[
                pl.BlockSpec((tile_n, c), batch_map),     # logits tile
                pl.BlockSpec((tile_n, 1), batch_map),     # targets tile
            ],
            out_specs=(
                pl.BlockSpec((1, 1, c), out_map),         # per-split S_c
                pl.BlockSpec((1, 1, c), out_map),         # per-split count_c
            ),
        ),
        compiler_params=pltpu.CompilerParams(
            dimension_semantics=("parallel", "arbitrary"),
            vmem_limit_bytes=vmem_limit_bytes,
        ),
    )(logits, targets_2d)          # native dtype in; f32 upcast in-kernel

    # --- tiny (2 x num_splits x C) finalize in plain JAX --------------------
    s = jnp.sum(s_part, axis=(0, 1))           # (C,)  sum_i 1[y_i=c] * nll_i
    counts = jnp.sum(cnt_part, axis=(0, 1))    # (C,)  per-class valid counts
    if weight_mode == "per_batch":
        total_valid = jnp.sum(counts)
        w = jnp.where(counts > 0.0,
                      total_valid / (jnp.float32(num_classes)
                                     * jnp.maximum(counts, 1.0)),
                      jnp.float32(clip_max))
        w = jnp.clip(w, clip_min, clip_max)
    else:
        w = jnp.ones_like(counts)
    return jnp.sum(w * s) / jnp.sum(w * counts)


def _reference(logits, targets, *, num_classes, ignore_index,
               clip_min, clip_max, weight_mode="per_batch"):
    """Pure-JAX reference (mirrors F.cross_entropy mean-reduction w/ weight)."""
    logits = logits.astype(jnp.float32)
    valid = targets != ignore_index
    safe_tgt = jnp.where(valid, targets, 0)
    counts = jnp.sum(
        jnp.where(valid[:, None],
                  jax.nn.one_hot(safe_tgt, num_classes, dtype=jnp.float32),
                  0.0),
        axis=0)
    if weight_mode == "per_batch":
        total = jnp.sum(counts)
        w = jnp.where(counts > 0,
                      total / (num_classes * jnp.maximum(counts, 1.0)),
                      clip_max)
        w = jnp.clip(w, clip_min, clip_max)
    else:
        w = jnp.ones((num_classes,), jnp.float32)
    logp = jax.nn.log_softmax(logits, axis=-1)
    nll = -jnp.take_along_axis(logp, safe_tgt[:, None], axis=-1)[:, 0]
    w_y = jnp.where(valid, w[safe_tgt], 0.0)
    return jnp.sum(w_y * nll) / jnp.sum(w_y)


if __name__ == "__main__":
    key = jax.random.PRNGKey(0)
    C = 8
    k1, k2, k3, k4, k5, k6 = jax.random.split(key, 6)

    def make(klog, ktgt, kign, n):
        lg = jax.random.normal(klog, (n, C), dtype=jnp.float32)
        tg = jax.random.randint(ktgt, (n,), 0, C, dtype=jnp.int32)
        ign = jax.random.uniform(kign, (n,)) < 0.1
        return lg, jnp.where(ign, jnp.int32(-100), tg)

    tol = dict(rtol=1e-4, atol=1e-5)

    # 1) divisible batch: 4 tiles -> 2 parallel splits x 2 tiles (no row mask).
    lg, tg = make(k1, k2, k3, 64)
    loss = jax.block_until_ready(dynamic_weight_cross_entropy_loss(
        lg, tg, num_classes=C, tile_n=16))
    ref = jax.block_until_ready(_reference(
        lg, tg, num_classes=C, ignore_index=-100, clip_min=0.0, clip_max=10.0))
    assert np.allclose(np.asarray(loss), np.asarray(ref), **tol), (loss, ref)

    # 2) ragged batch (77 % 16 != 0) and odd tile count (5 tiles over 2 splits
    #    -> one over-covering iteration): exercises the in-kernel row mask and
    #    the clamped index map (no jnp.pad / extra HBM pass anywhere).
    lg2, tg2 = make(k4, k5, k6, 77)
    loss2 = jax.block_until_ready(dynamic_weight_cross_entropy_loss(
        lg2, tg2, num_classes=C, tile_n=16))
    ref2 = jax.block_until_ready(_reference(
        lg2, tg2, num_classes=C, ignore_index=-100, clip_min=0.0, clip_max=10.0))
    assert np.allclose(np.asarray(loss2), np.asarray(ref2), **tol), (loss2, ref2)

    # 3) weight_mode='none' (plain masked-mean cross entropy).
    loss3 = jax.block_until_ready(dynamic_weight_cross_entropy_loss(
        lg, tg, num_classes=C, weight_mode="none", tile_n=16))
    ref3 = jax.block_until_ready(_reference(
        lg, tg, num_classes=C, ignore_index=-100, clip_min=0.0, clip_max=10.0,
        weight_mode="none"))
    assert np.allclose(np.asarray(loss3), np.asarray(ref3), **tol), (loss3, ref3)

    print("KERNEL_OK")
</pallas_src>

<mosaic_0001>
module attributes {stable_mosaic.version = 11 : i64} {
  func.func @_dwce_kernel(%arg0: i32, %arg1: i32, %arg2: memref<16x8xf32, #tpu.memory_space<vmem>>, %arg3: memref<16x1xi32, #tpu.memory_space<vmem>>, %arg4: memref<1x1x8xf32, #tpu.memory_space<vmem>>, %arg5: memref<1x1x8xf32, #tpu.memory_space<vmem>>) attributes {dimension_semantics = [#tpu.dimension_semantics<parallel>, #tpu.dimension_semantics<arbitrary>], iteration_bounds = array<i64: 2, 2>, scalar_prefetch = 0 : i64, scratch_operands = 0 : i64, tpu.core_type = #tpu.core_type<tc>, window_params = [{transform_indices = @transform_0, window_bounds = array<i64: 16, 8>}, {transform_indices = @transform_1, window_bounds = array<i64: 16, 1>}, {transform_indices = @transform_2, window_bounds = array<i64: 1, 1, 8>}, {transform_indices = @transform_3, window_bounds = array<i64: 1, 1, 8>}]} {
    %c0_i32 = arith.constant 0 : i32
    %0 = arith.cmpi eq, %arg1, %c0_i32 : i32
    %1 = arith.extui %0 : i1 to i32
    %c0_i32_0 = arith.constant 0 : i32
    %2 = arith.cmpi ne, %1, %c0_i32_0 : i32
    scf.if %2 {
      %cst_20 = arith.constant 0.000000e+00 : f32
      %36 = vector.broadcast %cst_20 : f32 to vector<1x1x8xf32>
      %c0_21 = arith.constant 0 : index
      %c0_22 = arith.constant 0 : index
      %c0_23 = arith.constant 0 : index
      %37 = vector.load %arg4[%c0_21, %c0_22, %c0_23] : memref<1x1x8xf32, #tpu.memory_space<vmem>>, vector<1x1x8xf32>
      tpu.vector_store %arg4[%c0_21, %c0_22, %c0_23], %36 {strides = array<i32>} : memref<1x1x8xf32, #tpu.memory_space<vmem>>, vector<1x1x8xf32>,
      %cst_24 = arith.constant 0.000000e+00 : f32
      %38 = vector.broadcast %cst_24 : f32 to vector<1x1x8xf32>
      %c0_25 = arith.constant 0 : index
      %c0_26 = arith.constant 0 : index
      %c0_27 = arith.constant 0 : index
      %39 = vector.load %arg5[%c0_25, %c0_26, %c0_27] : memref<1x1x8xf32, #tpu.memory_space<vmem>>, vector<1x1x8xf32>
      tpu.vector_store %arg5[%c0_25, %c0_26, %c0_27], %38 {strides = array<i32>} : memref<1x1x8xf32, #tpu.memory_space<vmem>>, vector<1x1x8xf32>,
    } else {
    }
    %c0 = arith.constant 0 : index
    %c0_1 = arith.constant 0 : index
    %3 = vector.load %arg2[%c0, %c0_1] : memref<16x8xf32, #tpu.memory_space<vmem>>, vector<16x8xf32>
    %c0_2 = arith.constant 0 : index
    %c0_3 = arith.constant 0 : index
    %4 = vector.load %arg3[%c0_2, %c0_3] : memref<16x1xi32, #tpu.memory_space<vmem>>, vector<16x1xi32>
    %cst = arith.constant dense<0xFF800000> : vector<16xf32>
    %5 = vector.multi_reduction <maximumf>, %3, %cst [1] : vector<16x8xf32> to vector<16xf32>
    %6 = vector.shape_cast %5 : vector<16xf32> to vector<16x1xf32>
    %7 = vector.broadcast %6 : vector<16x1xf32> to vector<16x8xf32>
    %8 = arith.subf %3, %7 : vector<16x8xf32>
    %9 = math.exp %8 : vector<16x8xf32>
    %cst_4 = arith.constant dense<0.000000e+00> : vector<16xf32>
    %10 = vector.multi_reduction <add>, %9, %cst_4 [1] : vector<16x8xf32> to vector<16xf32>
    %11 = vector.shape_cast %10 : vector<16xf32> to vector<16x1xf32>
    %12 = math.log %11 : vector<16x1xf32>
    %13 = arith.addf %12, %6 : vector<16x1xf32>
    %14 = tpu.iota {dimensions = array<i32: 1>} : vector<1x8xi32>
    %15 = vector.broadcast %4 : vector<16x1xi32> to vector<16x8xi32>
    %16 = vector.broadcast %14 : vector<1x8xi32> to vector<16x8xi32>
    %17 = arith.cmpi eq, %15, %16 : vector<16x8xi32>
    %18 = vector.broadcast %13 : vector<16x1xf32> to vector<16x8xf32>
    %19 = arith.subf %18, %3 : vector<16x8xf32>
    %cst_5 = arith.constant 0.000000e+00 : f32
    %20 = vector.broadcast %cst_5 : f32 to vector<16x8xf32>
    %21 = arith.select %17, %19, %20 : vector<16x8xi1>, vector<16x8xf32>
    %c0_6 = arith.constant 0 : index
    %c0_7 = arith.constant 0 : index
    %c0_8 = arith.constant 0 : index
    %22 = vector.load %arg4[%c0_6, %c0_7, %c0_8] : memref<1x1x8xf32, #tpu.memory_space<vmem>>, vector<1x1x8xf32>
    %cst_9 = arith.constant dense<0.000000e+00> : vector<8xf32>
    %23 = vector.multi_reduction <add>, %21, %cst_9 [0] : vector<16x8xf32> to vector<8xf32>
    %24 = vector.shape_cast %23 : vector<8xf32> to vector<1x8xf32>
    %25 = vector.shape_cast %24 : vector<1x8xf32> to vector<1x1x8xf32>
    %26 = arith.addf %22, %25 : vector<1x1x8xf32>
    %c0_10 = arith.constant 0 : index
    %c0_11 = arith.constant 0 : index
    %c0_12 = arith.constant 0 : index
    %27 = vector.load %arg4[%c0_10, %c0_11, %c0_12] : memref<1x1x8xf32, #tpu.memory_space<vmem>>, vector<1x1x8xf32>
    tpu.vector_store %arg4[%c0_10, %c0_11, %c0_12], %26 {strides = array<i32>} : memref<1x1x8xf32, #tpu.memory_space<vmem>>, vector<1x1x8xf32>,
    %c0_13 = arith.constant 0 : index
    %c0_14 = arith.constant 0 : index
    %c0_15 = arith.constant 0 : index
    %28 = vector.load %arg5[%c0_13, %c0_14, %c0_15] : memref<1x1x8xf32, #tpu.memory_space<vmem>>, vector<1x1x8xf32>
    %29 = arith.extui %17 : vector<16x8xi1> to vector<16x8xi32>
    %30 = arith.sitofp %29 : vector<16x8xi32> to vector<16x8xf32>
    %cst_16 = arith.constant dense<0.000000e+00> : vector<8xf32>
    %31 = vector.multi_reduction <add>, %30, %cst_16 [0] : vector<16x8xf32> to vector<8xf32>
    %32 = vector.shape_cast %31 : vector<8xf32> to vector<1x8xf32>
    %33 = vector.shape_cast %32 : vector<1x8xf32> to vector<1x1x8xf32>
    %34 = arith.addf %28, %33 : vector<1x1x8xf32>
    %c0_17 = arith.constant 0 : index
    %c0_18 = arith.constant 0 : index
    %c0_19 = arith.constant 0 : index
    %35 = vector.load %arg5[%c0_17, %c0_18, %c0_19] : memref<1x1x8xf32, #tpu.memory_space<vmem>>, vector<1x1x8xf32>
    tpu.vector_store %arg5[%c0_17, %c0_18, %c0_19], %34 {strides = array<i32>} : memref<1x1x8xf32, #tpu.memory_space<vmem>>, vector<1x1x8xf32>,
    return
  }
  func.func @transform_0(%arg0: i32, %arg1: i32) -> (i32, i32) {
    %c2_i32 = arith.constant 2 : i32
    %0 = arith.muli %arg0, %c2_i32 : i32
    %1 = arith.addi %0, %arg1 : i32
    %c0_i32 = arith.constant 0 : i32
    %c0_i32_0 = arith.constant 0 : i32
    return %1, %c0_i32 : i32, i32
  }
  func.func @transform_1(%arg0: i32, %arg1: i32) -> (i32, i32) {
    %c2_i32 = arith.constant 2 : i32
    %0 = arith.muli %arg0, %c2_i32 : i32
    %1 = arith.addi %0, %arg1 : i32
    %c0_i32 = arith.constant 0 : i32
    %c0_i32_0 = arith.constant 0 : i32
    return %1, %c0_i32 : i32, i32
  }
  func.func @transform_2(%arg0: i32, %arg1: i32) -> (i32, i32, i32) {
    %c0_i32 = arith.constant 0 : i32
    %c0_i32_0 = arith.constant 0 : i32
    %c0_i32_1 = arith.constant 0 : i32
    return %arg0, %c0_i32, %c0_i32_0 : i32, i32, i32
  }
  func.func @transform_3(%arg0: i32, %arg1: i32) -> (i32, i32, i32) {
    %c0_i32 = arith.constant 0 : i32
    %c0_i32_0 = arith.constant 0 : i32
    %c0_i32_1 = arith.constant 0 : i32
    return %arg0, %c0_i32, %c0_i32_0 : i32, i32, i32
  }
}

</mosaic_0001>

<bundles_post_ra>
// kernel: tpu_custom_call.1
= control target key start
LH: loop header
LB: loop body
LE: loop exit
PB: predicated region body
PF: predicated region fallthrough
CT: control target
= control target key end

     0   :  { %9 = vsyncpa [#allocation3], 0  ;;  %s907_s0 = inlined_call_operand.vmem [shape: f32[64,8], index: 0, kind: input, shape index: {}]   ;;  %s908_s1 = inlined_call_operand.vmem [shape: s32[64,1], index: 1, kind: input, shape index: {}]   ;;  %s909_s2 = inlined_call_operand.hbm [shape: f32[2,1,8], index: 2, kind: output, shape index: {0}]   ;;  %s910_s3 = inlined_call_operand.hbm [shape: f32[2,1,8], index: 3, kind: output, shape index: {1}]  }
   0x1   :  { %11 = vsyncpa [#allocation3 + $0x1], 0 }
   0x2   :  { %12 = vsyncpa [#allocation5], 0 }
   0x3   :  { %14 = vsyncpa [#allocation5 + $0x1], 0  ;;  %s717_s12 = smov 0   ;;  %s719_s13 = smov 0  }
   0x4   :  { %s721_s14 = smov 0   ;;  %s723_s15 = smov 0  }
   0x5   :  { %s725_s16 = smov 0   ;;  %s727_s17 = smov 0  }
   0x6   :  { %s729_s18 = smov 0   ;;  %s731_s19 = smov 0  }
   0x7 LB: > { %s457_s20 = sadd.s32 4294967295, %s690_s19   ;;  %s458_s21 = sadd.s32 4294967294, %s690_s19   ;;  %s690_s19 = sphi %s731_s19, %s20_s19   ;;  %s686_s18 = sphi %s729_s18, %s919_s18   ;;  %s682_s17 = sphi %s727_s17, %s918_s17   ;;  %s678_s16 = sphi %s725_s16, %s917_s16   ;;  %s674_s15 = sphi %s723_s15, %s916_s15   ;;  %s670_s14 = sphi %s721_s14, %s915_s14   ;;  %s666_s13 = sphi %s719_s13, %s914_s13   ;;  %s662_s12 = sphi %s717_s12, %s913_s12  }
   0x8   : > { %s29_s22 = sadd.s32 1, %s682_s17  ;;  %s32_s23 = sadd.s32 1, %s686_s18 }
   0x9   : > { %p30_p0 = scmp.ge.s32.totalorder %s29_s22, 2  ;;  %p109_p1 = scmp.ne.s32.totalorder %s670_s14, %s666_s13 }
   0xa   : > { %p110_p2 = scmp.eq.s32.totalorder %s457_s20, 3  ;;  %p115_p4 = scmp.ne.s32.totalorder %s666_s13, %s662_s12 }
   0xb   : > { %s921_s22 = smov (%p30_p0, %s29_s22), 0  ;;  %s923_s23 = smov (!%p30_p0, %s32_s23), %s686_s18 }
   0xc   : > { %p766_p3 = por %p110_p2, %p109_p1  ;;  %p34_p5 = scmp.ge.s32.totalorder %s923_s23, 2 }
   0xd   : > { %p116_p6 = scmp.eq.s32.totalorder %s458_s21, 3  ;;  %p465_p7 = scmp.ge.s32.totalorder %s690_s19, 1 }
   0xe   : > { %p186_p8 = scmp.lt.s32.totalorder %s690_s19, 5  ;;  %s925_s23 = smov (%p34_p5, %s923_s23), 0 }
   0xf   : > { %p776_p9 = por %p116_p6, %p115_p4  ;;  %s96_s26 = ssub.s32 %s686_s18, %s925_s23 }
  0x10   : > { %p187_p10 = pnand %p465_p7, %p186_p8  ;;  %s99_s27 = sadd.s32 1, %s670_s14 }
  0x11   : > { %p97_p11 = scmp.eq.s32.totalorder %s96_s26, 0  ;;  %s787_s29 = sand.u32 (!%p187_p10), 1, %s666_s13  }
  0x12   : > { %190 = sbr.rel (%p187_p10) target bundleno = 393 (0x189), region = 28  ;;  %s466_s30 = sshll.u32 (!%p187_p10), %s678_s16, 1 }
  0x13   : > { %s784_s28 = scalar_select %p97_p11, %s670_s14, %s99_s27  }
  0x14   : > { %s223_s4 = sadd.s32 (!%p187_p10), %s674_s15, %s466_s30  ;;  %s800_s21 = scalar_lea.vmem (!%p187_p10), [#allocation2], %s787_s29 }
  0x15   : > { %s467_s5 = sshll.u32 (!%p187_p10), %s223_s4, 1  ;;  %s803_s26 = scalar_lea.vmem (!%p187_p10), [#allocation4], %s787_s29 }
  0x16   : > { %p225_p12 = scmp.lt.s32.totalorder (!%p187_p10), %s467_s5, 7  ;;  %p472_p13 = scmp.ne.s32.totalorder (!%p187_p10), %s674_s15, 0 }
  0x18   : > { %s927_s5 = smov (!%p225_p12, %s467_s5), 7  ;;  %245 = sbr.rel (%p472_p13) target bundleno = 31 (0x1f), region = 32 }
  0x19   : > { %s468_s6 = sshll.u32 %s927_s5, 3 }
  0x1a   : > { %s228_s9 = scalar_lea.vmem %s907_s0, %s468_s6  ;;  %s797_s20 = scalar_lea.vmem %s908_s1, %s468_s6 }
  0x1d   : > { %vm246_vm0 = vcmask 57344   ;;  %v692_v0 = vmov 0.0  }
  0x1e   : > { %247 = vst.msk [vmem:[%s800_s21] sm:$0x1] %vm246_vm0, %v692_v0  ;;  %248 = vst.msk [vmem:[%s803_s26] sm:$0x1] %vm246_vm0, %v692_v0 }
  0x1f PF: > { %v249_v1 = vld [vmem:[%s228_s9] sm:$0xff]  ;;  %vm253_vm1 = vcmask 64512   ;;  %v250_v2 = vld [vmem:[%s228_s9 + $0x8] sm:$0xff]  ;;  %v693_v6 = vmov 0   ;;  %v278_v18 = vlaneseq  ;;  %v694_v23 = vmov 0.0   ;;  %s475_s15 = sshll.u32 %s678_s16, 4 }
  0x20   : > { %v254_v3 = vsel %vm253_vm1, %v249_v1, -inf  ;;  %v257_v4 = vsel %vm253_vm1, %v250_v2, -inf  ;;  %v251_v5 = vld [vmem:[%s797_s20] sm:$0xff]  ;;  %559 = vset.pattern.permute.xlu1 %v693_v6  ;;  %558 = vset.pattern.permute.xlu0 %v693_v6  ;;  %v252_v17 = vld [vmem:[%s797_s20 + $0x8] sm:$0xff]  ;;  %s351_s27 = sshll.u32 %s803_s26, 4  ;;  %vm303_vm4 = vcmask 57344   ;;  %s830_s5 = scalar_lea.hbm %s910_s3, %s475_s15  ;;  %s832_s27 = int_to_ptr.vmem [resolvable:$true] %s351_s27 }
  0x21   : > { %255 = vmax.xlane.f32.xlu0 %v254_v3  ;;  %v279_v19 = vand.u32 127, %v278_v18  ;;  %s326_s6 = scalar_lea.sflag [#allocation5], %s787_s29  ;;  %s568_s7 = scalar_lea.vmem %s832_s27, 16 }
  0x22   : > { %p569_p0 = scmp.ne.s32.totalorder %s832_s27, %s568_s7  ;;  %s695_s8 = smov [#allocation4]  }
  0x23   : > { %s572_s9 = sshll.u32 %s695_s8, 4  ;;  %s573_s9 = int_to_ptr.vmem [resolvable:$false] %s572_s9 }
  0x24   : > { %p570_p1 = pnand %p569_p0, %p766_p3  ;;  %s574_s10 = scalar_lea.vmem %s573_s9, 32 }
  0x25   : > { %258 = vmax.xlane.f32.xlu0 %v257_v4  ;;  %v305_v44 = vld [vmem:[%s803_s26] sm:$0x1]  ;;  %p575_p4 = scmp.lt.s32.totalorder %s832_s27, %s573_s9  ;;  %p576_p5 = scmp.lt.s32.totalorder %s574_s10, %s568_s7 }
  0x26   : > { %p571_p2 = pneg %p570_p1 }
  0x27   : > { %p577_p6 = por %p576_p5, %p575_p4 }
  0x29   : > { %p578_p7 = pnand %p577_p6, %p571_p2 }
  0x3b   : > { %281 = vperm.xlu0 %558, %v251_v5  }
  0xaa   : > { %v256_v7 = vpop.xlane.xlu0 %255 }
  0xab   : > { %v260_v8 = vsub.f32 %v249_v1, %v256_v7 }
  0xad   : > { %v262_v9 = vmul.f32 1.442695, %v260_v8 }
  0xae   : > { %v259_v10 = vpop.xlane.xlu0 %258 }
  0xaf   : > { %560 = vpow2.f32 %v262_v9  ;;  %v261_v11 = vsub.f32 %v250_v2, %v259_v10 }
  0xb1   : > { %v264_v12 = vmul.f32 1.442695, %v261_v11 }
  0xb3   : > { %562 = vpow2.f32 %v264_v12 }
  0xb6   : > { %v282_v21 = vpop.permute.xlu0 %281 }
  0xb7   : > { %vm286_vm2 = vcmp.eq.s32.totalorder %v282_v21, %v279_v19 }
  0xb8   : > { %v473_v24 = vsel %vm286_vm2, 1.0, %v694_v23 }
  0xb9   : > { %v310_v26 = vsel %vm253_vm1, %v473_v24, 0.0 }
  0xbc   : > { %v561_v13 = vpop.eup %560 }
  0xbd   : > { %v266_v14 = vsel %vm253_vm1, %v561_v13, 0.0 }
  0xbe   : > { %267 = vadd.xlane.f32.xlu1 %v266_v14 }
  0xc0   : > { %v563_v15 = vpop.eup %562 }
  0xc1   : > { %v269_v16 = vsel %vm253_vm1, %v563_v15, 0.0 }
  0xc2   : > { %270 = vadd.xlane.f32.xlu1 %v269_v16 }
  0xd3   : > { %284 = vperm.xlu1 %559, %v252_v17  }
 0x147   : > { %v268_v20 = vpop.xlane.xlu1 %267 }
 0x148   : > { %564 = vlog2.f32 %v268_v20 }
 0x14b   : > { %v271_v22 = vpop.xlane.xlu1 %270 }
 0x14c   : > { %566 = vlog2.f32 %v271_v22 }
 0x14f   : > { %v285_v25 = vpop.permute.xlu1 %284 }
 0x150   : > { %vm287_vm3 = vcmp.eq.s32.totalorder %v285_v25, %v279_v19 }
 0x151   : > { %v474_v27 = vsel %vm287_vm3, 1.0, %v694_v23 }
 0x152   : > { %v311_v28 = vsel %vm253_vm1, %v474_v27, 0.0 }
 0x153   : > { %v312_v29 = vadd.f32 %v311_v28, %v310_v26 }
 0x155   : > { %v565_v30 = vpop.eup %564  ;;  %v313_v31 = vrot.slane %v312_v29, 4 }
 0x156   : > { %v273_v32 = vmul.f32 0.6931472, %v565_v30 }
 0x157   : > { %v314_v33 = vadd.f32 %v313_v31, %v312_v29 }
 0x158   : > { %v276_v34 = vadd.f32 %v273_v32, %v256_v7 }
 0x159   : > { %v567_v35 = vpop.eup %566  ;;  %v315_v36 = vrot.slane %v314_v33, 2 }
 0x15a   : > { %v275_v37 = vmul.f32 0.6931472, %v567_v35  ;;  %v288_v38 = vsub.f32 %v276_v34, %v249_v1 }
 0x15b   : > { %v316_v39 = vadd.f32 %v315_v36, %v314_v33 }
 0x15c   : > { %v277_v40 = vadd.f32 %v275_v37, %v259_v10  ;;  %v290_v43 = vsel %vm286_vm2, %v288_v38, 0.0 }
 0x15d   : > { %v317_v41 = vrot.slane %v316_v39, 1  ;;  %v293_v48 = vsel %vm253_vm1, %v290_v43, 0.0 }
 0x15e   : > { %v289_v42 = vsub.f32 %v277_v40, %v250_v2 }
 0x15f   : > { %v318_v45 = vadd.f32 %v317_v41, %v316_v39 }
 0x160   : > { %v291_v46 = vsel %vm287_vm3, %v289_v42, 0.0 }
 0x161   : > { %v294_v47 = vsel %vm253_vm1, %v291_v46, 0.0  ;;  %v319_v49 = vadd.f32 %v318_v45, %v305_v44 }
 0x162   : > { %v295_v50 = vadd.f32 %v294_v47, %v293_v48 }
 0x163   : > { %320 = vst.msk [vmem:[%s803_s26] sm:$0x1] %vm303_vm4, %v319_v49 }
 0x164   : > { %v296_v51 = vrot.slane %v295_v50, 4 }
 0x165   : > { %581 = shalt.err (!%p578_p7)
}
 0x166   : > { %s582_s11 = scalar_lea.hbm %s830_s5, 16  ;;  %s586_s30 = scalar_lea.hbm %s910_s3, 32 }
 0x167   : > { %p583_p8 = scmp.ne.s32.totalorder %s830_s5, %s582_s11  ;;  %p587_p12 = scmp.lt.s32.totalorder %s830_s5, %s910_s3 }
 0x168   : > { %p588_p13 = scmp.lt.s32.totalorder %s586_s30, %s582_s11 }
 0x169   : > { %p584_p10 = pnand %p583_p8, %p766_p3 }
 0x16a   : > { %p589_p0 = por %p588_p13, %p587_p12 }
 0x16b   : > { %p585_p11 = pneg %p584_p10 }
 0x16d   : > { %p590_p1 = pnand %p589_p0, %p585_p11 }
 0x16f   : > { %593 = shalt.err (!%p590_p1)
}
 0x170   : > { %480 = dma.vmem_to_hbm [thread:$0]  (%p766_p3), %s832_s27, 16, %s830_s5, %s326_s6   ;;  %v297_v52 = vadd.f32 %v296_v51, %v295_v50  ;;  %v292_v56 = vld [vmem:[%s800_s21] sm:$0x1] }
 0x171   : > { %s338_s7 = sshll.u32 %s800_s21, 4  ;;  %s336_s11 = scalar_lea.hbm %s909_s2, %s475_s15  ;;  %s339_s7 = int_to_ptr.vmem [resolvable:$true] %s338_s7 }
 0x172   : > { %v298_v53 = vrot.slane %v297_v52, 2  ;;  %s322_s20 = scalar_lea.sflag [#allocation3], %s787_s29  ;;  %s594_s26 = scalar_lea.vmem %s339_s7, 16 }
 0x173   : > { %p595_p2 = scmp.ne.s32.totalorder %s339_s7, %s594_s26  ;;  %s696_s27 = smov [#allocation2]  }
 0x174   : > { %v299_v54 = vadd.f32 %v298_v53, %v297_v52  ;;  %s598_s5 = sshll.u32 %s696_s27, 4  ;;  %s599_s5 = int_to_ptr.vmem [resolvable:$false] %s598_s5 }
 0x175   : > { %p596_p4 = pnand %p595_p2, %p766_p3  ;;  %s600_s6 = scalar_lea.vmem %s599_s5, 32 }
 0x176   : > { %v300_v55 = vrot.slane %v299_v54, 1  ;;  %p601_p6 = scmp.lt.s32.totalorder %s339_s7, %s599_s5  ;;  %p602_p7 = scmp.lt.s32.totalorder %s600_s6, %s594_s26 }
 0x177   : > { %p597_p5 = pneg %p596_p4 }
 0x178   : > { %v301_v57 = vadd.f32 %v300_v55, %v299_v54  ;;  %p603_p8 = por %p602_p7, %p601_p6 }
 0x17a   : > { %v302_v58 = vadd.f32 %v301_v57, %v292_v56  ;;  %p604_p10 = pnand %p603_p8, %p597_p5 }
 0x17c   : > { %304 = vst.msk [vmem:[%s800_s21] sm:$0x1] %vm303_vm4, %v302_v58 }
 0x17d   : > { %607 = shalt.err (!%p604_p10)
}
 0x17e   : > { %s608_s16 = scalar_lea.hbm %s336_s11, 16  ;;  %s612_s15 = scalar_lea.hbm %s909_s2, 32 }
 0x17f   : > { %p609_p11 = scmp.ne.s32.totalorder %s336_s11, %s608_s16  ;;  %p613_p0 = scmp.lt.s32.totalorder %s336_s11, %s909_s2 }
 0x180   : > { %p614_p1 = scmp.lt.s32.totalorder %s612_s15, %s608_s16 }
 0x181   : > { %p610_p12 = pnand %p609_p11, %p766_p3 }
 0x182   : > { %p615_p2 = por %p614_p1, %p613_p0 }
 0x183   : > { %p611_p13 = pneg %p610_p12 }
 0x185   : > { %p616_p4 = pnand %p615_p2, %p611_p13 }
 0x187   : > { %619 = shalt.err (!%p616_p4)
}
 0x188   : > { %479 = dma.vmem_to_hbm [thread:$0]  (%p766_p3), %s339_s7, 16, %s336_s11, %s322_s20  }
 0x189 PF: > { %p490_p5 = scmp.ge.s32.totalorder %s690_s19, 2  ;;  %s363_s8 = sand.u32 1, %s662_s12  }
 0x18a   : > { %s364_s9 = scalar_lea.sflag [#allocation3], %s363_s8 }
 0x18b   : > { %p484_p6 = pnand %p490_p5, %p776_p9 }
 0x18d   : > { %p485_p7 = pneg %p484_p6 }
 0x18f   : > { %653 = dma.done.wait (%p485_p7), %s364_s9, 16  }
 0x190   : > { %655 = vsyncadd (%p485_p7), %s364_s9, 4294967280  ;;  %s372_s10 = scalar_lea.sflag [#allocation5], %s363_s8 }
 0x191   : > { %657 = dma.done.wait (%p485_p7), %s372_s10, 16  }
 0x192   : > { %659 = vsyncadd (%p485_p7), %s372_s10, 4294967280  ;;  %s20_s19 = sadd.s32 1, %s690_s19   ;;  %s913_s12 = smov %s666_s13 }
 0x193   : > { %p17_p8 = scmp.ge.s32.totalorder %s20_s19, 6   ;;  %s914_s13 = smov %s670_s14 }
 0x194   : > { %s915_s14 = smov %s784_s28  ;;  %s916_s15 = smov %s682_s17 }
 0x195   : > { %s917_s16 = smov %s686_s18  ;;  %s918_s17 = smov %s921_s22 }
 0x196   : > { %s919_s18 = smov %s925_s23  ;;  %19 = sbr.rel (!%p17_p8) target bundleno = 7 (0x7), region = 87 }
 0x19b   :  { %376 = vsyncpa [#allocation3], 1 }
 0x19c   :  { %378 = vsyncpa [#allocation3 + $0x1], 1 }
 0x19d   :  { %379 = vsyncpa [#allocation5], 1 }
 0x19e   :  { %381 = vsyncpa [#allocation5 + $0x1], 1 }

</bundles_post_ra>
